<compile_context>
chip_gen: v7x
topology: tpu7x:2x2x1
jax: 0.10.0
libtpu: 0.0.40
codegen_flags: <defaults>
</compile_context>

<pallas_src>
import jax
import jax.numpy as jnp
from jax import lax
from jax.experimental import pallas as pl
from jax.experimental.pallas import tpu as pltpu


def _round_up(v, m):
    return (v + m - 1) // m * m


def _adapter_kernel(x_ref, w1t_ref, w2t_ref, o_ref):
    # x_ref:   [TM, c_in]
    # w1t_ref: [c_in, h_pad]   (W1.T, hidden zero-padded to h_pad)
    # w2t_ref: [h_pad, c_in]   (W2.T, hidden zero-padded to h_pad)
    # o_ref:   [TM, c_in]
    x = x_ref[...]
    # x @ W1.T -> [TM, h_pad]; standard [M,K]@[K,N] contraction, f32 accumulation.
    h = lax.dot_general(
        x, w1t_ref[...], (((1,), (0,)), ((), ())),
        preferred_element_type=jnp.float32,
    )
    h = jnp.maximum(h, 0.0)                       # ReLU (inplace in torch)
    # relu(h) @ W2.T -> [TM, c_in]
    y = lax.dot_general(
        h.astype(w2t_ref.dtype), w2t_ref[...], (((1,), (0,)), ((), ())),
        preferred_element_type=jnp.float32,
    )
    o_ref[...] = jnp.maximum(y, 0.0).astype(o_ref.dtype)


def prepare_adapter_params(w1, w2, param_dtype=None):
    """One-time weight prep (hoisted out of the forward pass).

    w1: [hidden, c_in], w2: [c_in, hidden]  (PyTorch nn.Linear [out, in] layout)
    Returns (w1t, w2t): pre-transposed, hidden dim zero-padded to a multiple of
    128 (exact: padded hidden columns are 0 through matmul+ReLU and contribute 0
    to the second matmul), optionally cast to bf16 for the mem-bound fast path.
    """
    hidden, c_in = w1.shape
    assert w2.shape == (c_in, hidden)
    dt = param_dtype if param_dtype is not None else w1.dtype
    h_pad = _round_up(max(hidden, 1), 128)
    w1t = jnp.pad(jnp.asarray(w1, dt).T, ((0, 0), (0, h_pad - hidden)))  # [c_in, h_pad]
    w2t = jnp.pad(jnp.asarray(w2, dt).T, ((0, h_pad - hidden), (0, 0)))  # [h_pad, c_in]
    return w1t, w2t


def _vmem_cap_bytes():
    try:
        return int(pltpu.get_tpu_info().vmem_capacity_bytes)
    except Exception:
        return 64 * 2 ** 20          # conservative: v7x per-TensorCore VMEM


def adapter_forward(x, w1t, w2t, *, tm=None):
    """x: [..., c_in]; (w1t, w2t) from prepare_adapter_params()."""
    c_in = x.shape[-1]
    assert w1t.shape[0] == c_in and w2t.shape[1] == c_in
    h_pad = w1t.shape[1]
    lead = x.shape[:-1]

    x2d = x.reshape(-1, c_in)
    n = x2d.shape[0]

    x_itemsize = jnp.dtype(x.dtype).itemsize
    w_itemsize = jnp.dtype(w1t.dtype).itemsize
    row_align = 8 * max(1, 4 // x_itemsize)      # f32 -> 8 sublanes, bf16 -> 16

    # Row tile: big enough to pipeline, sublane-aligned, but never overshooting
    # n by more than the final (masked) partial block.
    if tm is None:
        TM = max(row_align, min(512, _round_up(n, row_align)))
    else:
        TM = tm
    grid = (pl.cdiv(n, TM),)

    # VMEM budget (per TensorCore): Pallas double-buffers every BlockSpec
    # operand, including the constant-index weight specs.
    w_bytes = (w1t.size + w2t.size) * w_itemsize
    vmem_need = (
        2 * TM * c_in * x_itemsize               # double-buffered input tiles
        + 2 * TM * c_in * x_itemsize             # double-buffered output tiles
        + 2 * w_bytes                            # resident (double-buffered) weights
        + TM * h_pad * 4 + TM * c_in * 4         # f32 intermediates
    )
    cap = _vmem_cap_bytes()
    vmem_limit = int(min(max(2 * vmem_need, 32 * 2 ** 20), int(0.75 * cap)))
    vmem_limit = max(vmem_limit, int(1.25 * vmem_need))
    # TODO(synk): for very wide c_in (f32 weights > ~0.3 * cap) add a K grid
    # axis over c_in with an f32 accumulator scratch instead of resident weights.

    flops = 4 * n * c_in * h_pad                 # two matmuls
    bytes_accessed = 2 * n * c_in * x_itemsize + w_bytes

    out2d = pl.pallas_call(
        _adapter_kernel,
        out_shape=jax.ShapeDtypeStruct((n, c_in), x.dtype),
        grid=grid,
        in_specs=[
            pl.BlockSpec((TM, c_in), lambda i: (i, 0)),
            pl.BlockSpec((c_in, h_pad), lambda i: (0, 0)),   # weights stay resident
            pl.BlockSpec((h_pad, c_in), lambda i: (0, 0)),
        ],
        out_specs=pl.BlockSpec((TM, c_in), lambda i: (i, 0)),
        compiler_params=pltpu.CompilerParams(
            dimension_semantics=("parallel",),
            vmem_limit_bytes=vmem_limit,
        ),
        cost_estimate=pl.CostEstimate(
            flops=flops, transcendentals=0, bytes_accessed=bytes_accessed),
    )(x2d, w1t, w2t)

    return out2d.reshape(*lead, c_in)


def _reference(x, w1, w2):
    h = jnp.maximum(x @ w1.T, 0.0)
    return jnp.maximum(h @ w2.T, 0.0)


if __name__ == "__main__":
    # Small shapes consistent with the module: tokens with feature dim c_in.
    batch, seq, c_in, reduction = 2, 8, 32, 4
    hidden = c_in // reduction

    key = jax.random.PRNGKey(0)
    kx, k1, k2 = jax.random.split(key, 3)

    x = jax.random.normal(kx, (batch, seq, c_in), dtype=jnp.float32)
    # Deterministic synthetic weights (nn.Linear shape conventions: [out, in]).
    bound1 = 1.0 / (c_in ** 0.5)
    bound2 = 1.0 / (hidden ** 0.5)
    w1 = jax.random.uniform(k1, (hidden, c_in), jnp.float32, -bound1, bound1)
    w2 = jax.random.uniform(k2, (c_in, hidden), jnp.float32, -bound2, bound2)

    # Parameter prep happens ONCE (transpose + pad + optional bf16 cast), not
    # per forward call.
    w1t, w2t = prepare_adapter_params(w1, w2)     # param_dtype=jnp.bfloat16 for fast path

    y = adapter_forward(x, w1t, w2t)
    jax.block_until_ready(y)

    y_ref = _reference(x, w1, w2)
    assert y.shape == x.shape
    assert jnp.allclose(y, y_ref, atol=1e-5, rtol=1e-5)

    print("KERNEL_OK")
</pallas_src>

<mosaic_0001>
module attributes {stable_mosaic.version = 11 : i64} {
  func.func @_adapter_kernel(%arg0: i32, %arg1: memref<16x32xf32, #tpu.memory_space<vmem>>, %arg2: memref<32x128xf32, #tpu.memory_space<vmem>>, %arg3: memref<128x32xf32, #tpu.memory_space<vmem>>, %arg4: memref<16x32xf32, #tpu.memory_space<vmem>>) attributes {dimension_semantics = [#tpu.dimension_semantics<parallel>], iteration_bounds = array<i64: 1>, scalar_prefetch = 0 : i64, scratch_operands = 0 : i64, tpu.core_type = #tpu.core_type<tc>, window_params = [{transform_indices = @transform_0, window_bounds = array<i64: 16, 32>}, {pipeline_mode = #tpu.pipeline_mode<synchronous>, transform_indices = @transform_1, window_bounds = array<i64: 32, 128>}, {pipeline_mode = #tpu.pipeline_mode<synchronous>, transform_indices = @transform_2, window_bounds = array<i64: 128, 32>}, {transform_indices = @transform_3, window_bounds = array<i64: 16, 32>}]} {
    %c0 = arith.constant 0 : index
    %c0_0 = arith.constant 0 : index
    %0 = vector.load %arg1[%c0, %c0_0] : memref<16x32xf32, #tpu.memory_space<vmem>>, vector<16x32xf32>
    %c0_1 = arith.constant 0 : index
    %c0_2 = arith.constant 0 : index
    %1 = vector.load %arg2[%c0_1, %c0_2] : memref<32x128xf32, #tpu.memory_space<vmem>>, vector<32x128xf32>
    %cst = arith.constant dense<0.000000e+00> : vector<16x128xf32>
    %2 = tpu.matmul %0, %1, %cst {dimension_numbers = #tpu.dot_dimension_numbers<[1], [0], [0], [1], [0, 0, 1, 1], [], []>} : vector<16x32xf32>, vector<32x128xf32>, vector<16x128xf32> -> vector<16x128xf32>
    %cst_3 = arith.constant 0.000000e+00 : f32
    %3 = vector.broadcast %cst_3 : f32 to vector<16x128xf32>
    %4 = arith.maximumf %2, %3 : vector<16x128xf32>
    %c0_4 = arith.constant 0 : index
    %c0_5 = arith.constant 0 : index
    %5 = vector.load %arg3[%c0_4, %c0_5] : memref<128x32xf32, #tpu.memory_space<vmem>>, vector<128x32xf32>
    %cst_6 = arith.constant dense<0.000000e+00> : vector<16x32xf32>
    %6 = tpu.matmul %4, %5, %cst_6 {dimension_numbers = #tpu.dot_dimension_numbers<[1], [0], [0], [1], [0, 0, 1, 1], [], []>} : vector<16x128xf32>, vector<128x32xf32>, vector<16x32xf32> -> vector<16x32xf32>
    %cst_7 = arith.constant 0.000000e+00 : f32
    %7 = vector.broadcast %cst_7 : f32 to vector<16x32xf32>
    %8 = arith.maximumf %6, %7 : vector<16x32xf32>
    %c0_8 = arith.constant 0 : index
    %c0_9 = arith.constant 0 : index
    %9 = vector.load %arg4[%c0_8, %c0_9] : memref<16x32xf32, #tpu.memory_space<vmem>>, vector<16x32xf32>
    tpu.vector_store %arg4[%c0_8, %c0_9], %8 {strides = array<i32>} : memref<16x32xf32, #tpu.memory_space<vmem>>, vector<16x32xf32>,
    return
  }
  func.func @transform_0(%arg0: i32) -> (i32, i32) {
    %c0_i32 = arith.constant 0 : i32
    %c0_i32_0 = arith.constant 0 : i32
    return %arg0, %c0_i32 : i32, i32
  }
  func.func @transform_1(%arg0: i32) -> (i32, i32) {
    %c0_i32 = arith.constant 0 : i32
    %c0_i32_0 = arith.constant 0 : i32
    %c0_i32_1 = arith.constant 0 : i32
    return %c0_i32, %c0_i32_0 : i32, i32
  }
  func.func @transform_2(%arg0: i32) -> (i32, i32) {
    %c0_i32 = arith.constant 0 : i32
    %c0_i32_0 = arith.constant 0 : i32
    %c0_i32_1 = arith.constant 0 : i32
    return %c0_i32, %c0_i32_0 : i32, i32
  }
  func.func @transform_3(%arg0: i32) -> (i32, i32) {
    %c0_i32 = arith.constant 0 : i32
    %c0_i32_0 = arith.constant 0 : i32
    return %arg0, %c0_i32 : i32, i32
  }
}

</mosaic_0001>

<bundles_post_ra>
// kernel: tpu_custom_call.1
= control target key start
LH: loop header
LB: loop body
LE: loop exit
PB: predicated region body
PF: predicated region fallthrough
CT: control target
= control target key end

     0   :  { %vm21_vm0 = vcmask 261120   ;;  %s460_s0 = inlined_call_operand.vmem [shape: f32[16,32], index: 0, kind: input, shape index: {}]   ;;  %s461_s1 = inlined_call_operand.vmem [shape: f32[32,128], index: 1, kind: input, shape index: {}]   ;;  %s462_s2 = inlined_call_operand.vmem [shape: f32[128,32], index: 2, kind: input, shape index: {}]   ;;  %s463_s3 = inlined_call_operand.hbm [shape: f32[16,32], index: 3, kind: output, shape index: {}]  }
   0x1   :  { %v17_v0 = vld [vmem:[%s461_s1] sm:$0xff]  ;;  %v18_v1 = vld [vmem:[%s461_s1 + $0x8] sm:$0xff]  ;;  %v19_v2 = vld [vmem:[%s461_s1 + $0x10] sm:$0xff] }
   0x2   :  { %v288_v3 = vpack.c.bf16 %v18_v1, %v17_v0  ;;  %v20_v4 = vld [vmem:[%s461_s1 + $0x18] sm:$0xff]  ;;  %v15_v5 = vld [vmem:[%s460_s0] sm:$0xff]  ;;  %v106_v8 = vld [vmem:[%s462_s2 + $0x8] sm:$0xff] }
   0x3   :  { %v292_v6 = vpack.c.bf16 %v20_v4, %v19_v2  ;;  %250 = vmatprep.mubr.msk.f32.mxu0 %vm21_vm0, %v15_v5  ;;  %v105_v7 = vld [vmem:[%s462_s2] sm:$0xff]  ;;  %v107_v9 = vld [vmem:[%s462_s2 + $0x10] sm:$0xff]  ;;  %v108_v11 = vld [vmem:[%s462_s2 + $0x18] sm:$0xff] }
   0x4   :  { %289 = vmatprep.subr.bf16.mxu0 %v288_v3  ;;  %v296_v10 = vpack.c.bf16 %v106_v8, %v105_v7  ;;  %v300_v12 = vpack.c.bf16 %v108_v11, %v107_v9  ;;  %v109_v13 = vld [vmem:[%s462_s2 + $0x20] sm:$0xff]  ;;  %v110_v14 = vld [vmem:[%s462_s2 + $0x28] sm:$0xff] }
   0x5   :  { %291 = vmatpush3.bf16.msra.mxu0 %v288_v3 }
   0x6   :  { %293 = vmatprep.subr.bf16.mxu0 %v292_v6  ;;  %297 = vmatprep.subr.bf16.mxu1 %v296_v10 }
   0x7   :  { %299 = vmatpush3.bf16.msra.mxu1 %v296_v10 }
   0x8   :  { %8 = vsyncpa [#allocation3], 0  ;;  %301 = vmatprep.subr.bf16.mxu1 %v300_v12  ;;  %v304_v15 = vpack.c.bf16 %v110_v14, %v109_v13  ;;  %v16_v16 = vld [vmem:[%s460_s0 + $0x8] sm:$0xff]  ;;  %v111_v17 = vld [vmem:[%s462_s2 + $0x30] sm:$0xff]  ;;  %s355_s27 = smov [#allocation2]  }
   0x9   :  { %295 = vmatpush3.bf16.msra.mxu0 %v292_v6  ;;  %v112_v18 = vld [vmem:[%s462_s2 + $0x38] sm:$0xff]  ;;  %v113_v20 = vld [vmem:[%s462_s2 + $0x40] sm:$0xff]  ;;  %v114_v21 = vld [vmem:[%s462_s2 + $0x48] sm:$0xff]  ;;  %s205_s1 = sshll.u32 %s355_s27, 4  ;;  %s206_s1 = int_to_ptr.vmem [resolvable:$true] %s205_s1 }
   0xa   :  { %v308_v19 = vpack.c.bf16 %v112_v18, %v111_v17  ;;  %v312_v22 = vpack.c.bf16 %v114_v21, %v113_v20  ;;  %v115_v23 = vld [vmem:[%s462_s2 + $0x50] sm:$0xff]  ;;  %v116_v24 = vld [vmem:[%s462_s2 + $0x58] sm:$0xff]  ;;  %v117_v26 = vld [vmem:[%s462_s2 + $0x60] sm:$0xff]  ;;  %p336_p1 = scmp.lt.s32.totalorder %s206_s1, %s206_s1 }
   0xb   :  { %303 = vmatpush3.bf16.msra.mxu1 %v300_v12  ;;  %v316_v25 = vpack.c.bf16 %v116_v24, %v115_v23  ;;  %v118_v27 = vld [vmem:[%s462_s2 + $0x68] sm:$0xff]  ;;  %v119_v29 = vld [vmem:[%s462_s2 + $0x70] sm:$0xff]  ;;  %v120_v30 = vld [vmem:[%s462_s2 + $0x78] sm:$0xff]  ;;  %s331_s2 = scalar_lea.vmem %s206_s1, 256 }
   0xc   :  { %251 = vmatmul.mubr.msk.f32.vlgmr.msra.gmra.mrb[0].mxu0 %vm21_vm0, %v16_v16  ;;  %305 = vmatprep.subr.bf16.mxu1 %v304_v15  ;;  %v320_v28 = vpack.c.bf16 %v118_v27, %v117_v26  ;;  %v324_v31 = vpack.c.bf16 %v120_v30, %v119_v29  ;;  %p332_p0 = scmp.ne.s32.totalorder %s206_s1, %s331_s2  ;;  %p337_p2 = scmp.lt.s32.totalorder %s331_s2, %s331_s2 }
   0xe   :  { %p338_p3 = por %p337_p2, %p336_p1 }
   0xf   :  { %307 = vmatpush3.bf16.msra.mxu1 %v304_v15 }
  0x10   :  { %309 = vmatprep.subr.bf16.mxu1 %v308_v19  ;;  %p339_p4 = pnand %p338_p3, %p332_p0 }
  0x13   :  { %311 = vmatpush3.bf16.msra.mxu1 %v308_v19 }
  0x14   :  { %313 = vmatprep.subr.bf16.mxu1 %v312_v22 }
  0x17   :  { %315 = vmatpush3.bf16.msra.mxu1 %v312_v22 }
  0x18   :  { %317 = vmatprep.subr.bf16.mxu1 %v316_v25 }
  0x1b   :  { %319 = vmatpush3.bf16.msra.mxu1 %v316_v25 }
  0x1c   :  { %321 = vmatprep.subr.bf16.mxu1 %v320_v28 }
  0x1f   :  { %323 = vmatpush3.bf16.msra.mxu1 %v320_v28 }
  0x20   :  { %325 = vmatprep.subr.bf16.mxu1 %v324_v31 }
  0x23   :  { %327 = vmatpush3.bf16.msra.mxu1 %v324_v31 }
  0xdf   :  { %v252_v32 = vpop.f32.mrb[0].mxu0 }
  0xe0   :  { %v94_v33 = vpop.f32.mrb[1].mxu0  ;;  %v104_v35 = vmax.f32 %v252_v32, 0.0 }
  0xe1   :  { %v103_v34 = vmax.f32 %v94_v33, 0.0 }
  0xe3   :  { %285 = vmatprep.mubr.f32.mxu1 %v103_v34 }
  0xe4   :  { %286 = vmatmul.mubr.f32.vlgmr.msra.gmra.mrb[0].mxu1 %v104_v35 }
 0x1b7   :  { %v287_v36 = vpop.f32.mrb[0].mxu1 }
 0x1b8   :  { %v197_v37 = vmax.f32 %v287_v36, 0.0  ;;  %v187_v38 = vpop.f32.mrb[1].mxu1 }
 0x1b9   :  { %v196_v39 = vmax.f32 %v187_v38, 0.0 }
 0x1ba   :  { %199 = vst.msk [vmem:[#allocation2 + $0x8] sm:$0xff] %vm21_vm0, %v197_v37 }
 0x1bb   :  { %198 = vst.msk [vmem:[#allocation2] sm:$0xff] %vm21_vm0, %v196_v39 }
 0x1bc   :  { %342 = shalt.err (!%p339_p4)
}
 0x1bd   :  { %s343_s30 = scalar_lea.hbm %s463_s3, 256 }
 0x1be   :  { %p344_p5 = scmp.ne.s32.totalorder %s463_s3, %s343_s30  ;;  %p347_p6 = scmp.lt.u32.totalorder %s343_s30, %s463_s3 }
 0x1c0   :  { %p349_p7 = pnand %p347_p6, %p344_p5 }
 0x1c2   :  { %352 = shalt.err (!%p349_p7)
}
 0x1c3   :  { %s356_s8 = smov 128   ;;  %s357_s9 = smov 8  }
 0x1c4   :  { %211 = dma.vmem_to_hbm [thread:$0]  %s206_s1, 256, %s463_s3, [#allocation3], %s356_s8, %s356_s8, %s357_s9  }
 0x1c5   :  { %353 = dma.done.wait [#allocation3], 256  }
 0x1c6   :  { %354 = vsyncadd [#allocation3], 4294967040 }
 0x1c7   :  { %215 = vsyncpa [#allocation3], 1 }

</bundles_post_ra>
